<compile_context>
chip_gen: v5e
topology: v5e:2x2
jax: 0.10.0
libtpu: 0.0.40
codegen_flags: <defaults>
</compile_context>

<pallas_src>
import functools
import math

import jax
import jax.numpy as jnp
from jax.experimental import pallas as pl
from jax.experimental.pallas import tpu as pltpu


# ---------------------------------------------------------------------------
# Path 1: pure HBM->HBM DMA concat (no VMEM round trip).
# ---------------------------------------------------------------------------
def _dma_concat_kernel(sizes, *refs):
    """Issue one strided HBM->HBM DMA per input into its channel slab, then wait."""
    n = len(sizes)
    in_refs = refs[:n]
    out_ref = refs[n]
    sem = refs[n + 1]
    copies = []
    off = 0
    for i, (r, sz) in enumerate(zip(in_refs, sizes)):
        cp = pltpu.make_async_copy(r, out_ref.at[:, off:off + sz, :], sem.at[i])
        cp.start()
        copies.append(cp)
        off += sz
    for cp in copies:
        cp.wait()


def _dma_concat_supported(sizes, q, itemsize):
    """Only take the HBM->HBM path when destination slices are whole (sublane,lane) tiles."""
    sub = max(8, 32 // itemsize)  # sublane packing: 8 (4-byte), 16 (2-byte), 32 (1-byte)
    return (q % 128 == 0) and all(s % sub == 0 for s in sizes)


def _concat_via_hbm_dma(inputs3, sizes, p, q, c_total, dtype, total_bytes):
    n = len(inputs3)
    return pl.pallas_call(
        functools.partial(_dma_concat_kernel, sizes),
        out_shape=jax.ShapeDtypeStruct((p, c_total, q), dtype),
        in_specs=[pl.BlockSpec(memory_space=pl.ANY) for _ in range(n)],
        out_specs=pl.BlockSpec(memory_space=pl.ANY),
        scratch_shapes=[pltpu.SemaphoreType.DMA((n,))],
        compiler_params=pltpu.CompilerParams(has_side_effects=True),
        cost_estimate=pl.CostEstimate(
            flops=0, transcendentals=0, bytes_accessed=2 * total_bytes),
    )(*inputs3)


# ---------------------------------------------------------------------------
# Path 2: pipelined BlockSpec copy (handles misaligned channels / ragged Q).
# ---------------------------------------------------------------------------
def _copy_concat_kernel(sizes, *refs):
    """Write each input block into its static channel-slice of the output block."""
    in_refs = refs[:-1]
    out_ref = refs[-1]
    nd = len(out_ref.shape)
    off = 0
    for r, sz in zip(in_refs, sizes):
        if nd == 3:
            out_ref[:, off:off + sz, :] = r[...]
        else:
            out_ref[off:off + sz, :] = r[...]
        off += sz


def _choose_tile_q(p, q, c_total, itemsize,
                   live_budget_bytes=24 * 1024 * 1024,
                   max_tile_q=2048,
                   min_grid_steps=8):
    """Lane-aligned tile along the flattened trailing axis.

    Live bytes per step = (inputs + output blocks) * 2 buffers
                        = 4 * c_total * tile_q * itemsize.
    Budget is sized for v7x's 64 MiB physical VMEM (v5e/v6e have 128 MiB).
    """
    if q <= 128:
        return q  # full (possibly <128) last dim: single lane tile, always legal
    max_by_vmem = live_budget_bytes // (4 * c_total * itemsize)
    tile = min(q, max_tile_q, max(128, max_by_vmem))
    tile = max(128, (tile // 128) * 128)
    # Keep the tile within the 128-rounded array extent so edge blocks stay small.
    tile = min(tile, (q // 128) * 128)
    tile = max(tile, 128)
    # Ensure enough grid steps for pipelining and the v7x 2-TensorCore split.
    while tile > 128 and p * pl.cdiv(q, tile) < min_grid_steps:
        tile -= 128
    # NOTE: for extremely large c_total even a 128-lane tile may exceed the
    # budget; a channel-axis tiling fallback would be needed there (not hit by
    # realistic YOLO layer sizes).
    return tile


def _concat_via_copy_pipeline(inputs3, sizes, p, q, c_total, dtype, itemsize,
                              total_bytes):
    tile_q = _choose_tile_q(p, q, c_total, itemsize)
    grid_q = pl.cdiv(q, tile_q)

    if p == 1:
        # Drop the size-1 leading dim: real 1-axis grid, 2-D blocks.
        views = [x.reshape(s, q) for x, s in zip(inputs3, sizes)]
        grid = (grid_q,)
        in_specs = [pl.BlockSpec((s, tile_q), lambda j: (0, j)) for s in sizes]
        out_specs = pl.BlockSpec((c_total, tile_q), lambda j: (0, j))
        out_shape = jax.ShapeDtypeStruct((c_total, q), dtype)
        semantics = ("parallel",)
    else:
        views = inputs3
        grid = (p, grid_q)
        in_specs = [pl.BlockSpec((1, s, tile_q), lambda i, j: (i, 0, j))
                    for s in sizes]
        out_specs = pl.BlockSpec((1, c_total, tile_q), lambda i, j: (i, 0, j))
        out_shape = jax.ShapeDtypeStruct((p, c_total, q), dtype)
        semantics = ("parallel", "parallel")

    return pl.pallas_call(
        functools.partial(_copy_concat_kernel, sizes),
        out_shape=out_shape,
        grid=grid,
        in_specs=in_specs,
        out_specs=out_specs,
        compiler_params=pltpu.CompilerParams(
            dimension_semantics=semantics,
            vmem_limit_bytes=48 * 1024 * 1024,
        ),
        cost_estimate=pl.CostEstimate(
            flops=0, transcendentals=0, bytes_accessed=2 * total_bytes),
    )(*views)


# ---------------------------------------------------------------------------
# Public wrapper.
# ---------------------------------------------------------------------------
def pallas_concat(inputs, dim=1, *, xla_fallback_bytes=0):
    """Concatenate a list/tuple of arrays along `dim` with a Pallas TPU kernel."""
    inputs = list(inputs)
    assert len(inputs) >= 1, "Concat needs at least one input"
    ndim = inputs[0].ndim
    dim = dim % ndim
    dtype = inputs[0].dtype

    sizes = [int(x.shape[dim]) for x in inputs]
    c_total = sum(sizes)
    out_shape = list(inputs[0].shape)
    out_shape[dim] = c_total
    out_shape = tuple(out_shape)

    for x in inputs:
        assert x.dtype == dtype, "all inputs must share a dtype"
        for ax in range(ndim):
            if ax != dim:
                assert x.shape[ax] == inputs[0].shape[ax], "non-concat dims must match"

    itemsize = jnp.dtype(dtype).itemsize
    total_bytes = sum(x.size * itemsize for x in inputs)

    # Optional tiny-input fallback (lets XLA fuse the concat into neighbors).
    # Disabled by default so the Pallas kernels are always exercised.
    if total_bytes < xla_fallback_bytes:
        return jnp.concatenate(inputs, axis=dim)

    # Lane-dense 3-D view: (P, C_i, Q), Q = prod(trailing dims).
    lead = inputs[0].shape[:dim]
    trail = inputs[0].shape[dim + 1:]
    p = int(math.prod(lead)) if lead else 1
    q = int(math.prod(trail)) if trail else 1
    inputs3 = [x.reshape(p, s, q) for x, s in zip(inputs, sizes)]

    if _dma_concat_supported(sizes, q, itemsize):
        try:
            out3 = _concat_via_hbm_dma(inputs3, sizes, p, q, c_total, dtype,
                                       total_bytes)
            return out3.reshape(out_shape)
        except Exception:
            # If this platform/layout rejects the strided HBM->HBM DMA, fall
            # back to the pipelined VMEM copy path below (eager-mode safety net).
            pass

    out = _concat_via_copy_pipeline(inputs3, sizes, p, q, c_total, dtype,
                                    itemsize, total_bytes)
    return out.reshape(out_shape)


class Concat:
    """JAX/Pallas equivalent of the PyTorch Concat module (no parameters)."""

    def __init__(self, dim=1):
        self.dim = dim

    def __call__(self, inputs):
        return pallas_concat(inputs, self.dim)


if __name__ == "__main__":
    key = jax.random.PRNGKey(0)
    keys = jax.random.split(key, 10)
    model = Concat(dim=1)

    # Case A: sublane-aligned channels + lane-dense spatial -> HBM->HBM DMA path.
    a1 = jax.random.normal(keys[0], (2, 8, 16, 16), dtype=jnp.float32)
    a2 = jax.random.normal(keys[1], (2, 16, 16, 16), dtype=jnp.float32)
    a3 = jax.random.normal(keys[2], (2, 8, 16, 16), dtype=jnp.float32)
    out_a = jax.block_until_ready(model([a1, a2, a3]))
    ref_a = jnp.concatenate([a1, a2, a3], axis=1)
    assert out_a.shape == ref_a.shape and out_a.dtype == ref_a.dtype
    assert jnp.array_equal(out_a, ref_a), "case A mismatch"

    # Case B: misaligned channel sizes -> pipelined BlockSpec copy path (3-D).
    b1 = jax.random.normal(keys[3], (2, 4, 16, 16), dtype=jnp.float32)
    b2 = jax.random.normal(keys[4], (2, 8, 16, 16), dtype=jnp.float32)
    b3 = jax.random.normal(keys[5], (2, 4, 16, 16), dtype=jnp.float32)
    out_b = jax.block_until_ready(model([b1, b2, b3]))
    ref_b = jnp.concatenate([b1, b2, b3], axis=1)
    assert jnp.array_equal(out_b, ref_b), "case B mismatch"

    # Case C: small trailing extent (H*W = 100 < 128) -> full-width last-dim block.
    c1 = jax.random.normal(keys[6], (2, 4, 10, 10), dtype=jnp.float32)
    c2 = jax.random.normal(keys[7], (2, 6, 10, 10), dtype=jnp.float32)
    out_c = jax.block_until_ready(model([c1, c2]))
    ref_c = jnp.concatenate([c1, c2], axis=1)
    assert jnp.array_equal(out_c, ref_c), "case C mismatch"

    # Case D: batch-1 inference with ragged Q (H*W = 400) -> 2-D path + cdiv edge block.
    d1 = jax.random.normal(keys[8], (1, 4, 20, 20), dtype=jnp.float32)
    d2 = jax.random.normal(keys[9], (1, 12, 20, 20), dtype=jnp.float32)
    out_d = jax.block_until_ready(model([d1, d2]))
    ref_d = jnp.concatenate([d1, d2], axis=1)
    assert jnp.array_equal(out_d, ref_d), "case D mismatch"

    print("KERNEL_OK")
</pallas_src>

<mosaic_0001>
module attributes {stable_mosaic.version = 11 : i64} {
  func.func @_dma_concat_kernel(%arg0: memref<2x8x256xf32, #tpu.memory_space<any>>, %arg1: memref<2x16x256xf32, #tpu.memory_space<any>>, %arg2: memref<2x8x256xf32, #tpu.memory_space<any>>, %arg3: memref<2x32x256xf32, #tpu.memory_space<any>>, %arg4: memref<3x!tpu.dma_semaphore, #tpu.memory_space<semaphore_mem>>) attributes {dimension_semantics = [], scalar_prefetch = 0 : i64, scratch_operands = 1 : i64, tpu.core_type = #tpu.core_type<tc>} {
    %c0_i32 = arith.constant 0 : i32
    %c0_i32_0 = arith.constant 0 : i32
    %c0_i32_1 = arith.constant 0 : i32
    %c0_i32_2 = arith.constant 0 : i32
    %0 = tpu.memref_slice %arg3[%c0_i32_0, %c0_i32_1, %c0_i32_2] : memref<2x32x256xf32, #tpu.memory_space<any>> -> memref<2x8x256xf32, #tpu.memory_space<any>>
    %1 = tpu.memref_slice %arg4[%c0_i32] : memref<3x!tpu.dma_semaphore, #tpu.memory_space<semaphore_mem>> -> memref<1x!tpu.dma_semaphore, #tpu.memory_space<semaphore_mem>>
    %2 = tpu.memref_squeeze %1 : memref<1x!tpu.dma_semaphore, #tpu.memory_space<semaphore_mem>> -> memref<!tpu.dma_semaphore, #tpu.memory_space<semaphore_mem>>
    tpu.enqueue_dma source(%arg0 : memref<2x8x256xf32, #tpu.memory_space<any>>) target(%0 : memref<2x8x256xf32, #tpu.memory_space<any>>) target_semaphore(%2 : memref<!tpu.dma_semaphore, #tpu.memory_space<semaphore_mem>>)
    %c1_i32 = arith.constant 1 : i32
    %c0_i32_3 = arith.constant 0 : i32
    %c8_i32 = arith.constant 8 : i32
    %c0_i32_4 = arith.constant 0 : i32
    %3 = tpu.memref_slice %arg3[%c0_i32_3, %c8_i32, %c0_i32_4] : memref<2x32x256xf32, #tpu.memory_space<any>> -> memref<2x16x256xf32, #tpu.memory_space<any>>
    %4 = tpu.memref_slice %arg4[%c1_i32] : memref<3x!tpu.dma_semaphore, #tpu.memory_space<semaphore_mem>> -> memref<1x!tpu.dma_semaphore, #tpu.memory_space<semaphore_mem>>
    %5 = tpu.memref_squeeze %4 : memref<1x!tpu.dma_semaphore, #tpu.memory_space<semaphore_mem>> -> memref<!tpu.dma_semaphore, #tpu.memory_space<semaphore_mem>>
    tpu.enqueue_dma source(%arg1 : memref<2x16x256xf32, #tpu.memory_space<any>>) target(%3 : memref<2x16x256xf32, #tpu.memory_space<any>>) target_semaphore(%5 : memref<!tpu.dma_semaphore, #tpu.memory_space<semaphore_mem>>)
    %c2_i32 = arith.constant 2 : i32
    %c0_i32_5 = arith.constant 0 : i32
    %c24_i32 = arith.constant 24 : i32
    %c0_i32_6 = arith.constant 0 : i32
    %6 = tpu.memref_slice %arg3[%c0_i32_5, %c24_i32, %c0_i32_6] : memref<2x32x256xf32, #tpu.memory_space<any>> -> memref<2x8x256xf32, #tpu.memory_space<any>>
    %7 = tpu.memref_slice %arg4[%c2_i32] : memref<3x!tpu.dma_semaphore, #tpu.memory_space<semaphore_mem>> -> memref<1x!tpu.dma_semaphore, #tpu.memory_space<semaphore_mem>>
    %8 = tpu.memref_squeeze %7 : memref<1x!tpu.dma_semaphore, #tpu.memory_space<semaphore_mem>> -> memref<!tpu.dma_semaphore, #tpu.memory_space<semaphore_mem>>
    tpu.enqueue_dma source(%arg2 : memref<2x8x256xf32, #tpu.memory_space<any>>) target(%6 : memref<2x8x256xf32, #tpu.memory_space<any>>) target_semaphore(%8 : memref<!tpu.dma_semaphore, #tpu.memory_space<semaphore_mem>>)
    %c0_i32_7 = arith.constant 0 : i32
    %c0_i32_8 = arith.constant 0 : i32
    %c0_i32_9 = arith.constant 0 : i32
    %c0_i32_10 = arith.constant 0 : i32
    %9 = tpu.memref_slice %arg3[%c0_i32_8, %c0_i32_9, %c0_i32_10] : memref<2x32x256xf32, #tpu.memory_space<any>> -> memref<2x8x256xf32, #tpu.memory_space<any>>
    %10 = tpu.memref_slice %arg4[%c0_i32_7] : memref<3x!tpu.dma_semaphore, #tpu.memory_space<semaphore_mem>> -> memref<1x!tpu.dma_semaphore, #tpu.memory_space<semaphore_mem>>
    %11 = tpu.memref_squeeze %10 : memref<1x!tpu.dma_semaphore, #tpu.memory_space<semaphore_mem>> -> memref<!tpu.dma_semaphore, #tpu.memory_space<semaphore_mem>>
    tpu.wait_dma2 semaphore(%11 : memref<!tpu.dma_semaphore, #tpu.memory_space<semaphore_mem>>) src(%arg0 : memref<2x8x256xf32, #tpu.memory_space<any>>) dst(%9 : memref<2x8x256xf32, #tpu.memory_space<any>>)
    %c1_i32_11 = arith.constant 1 : i32
    %c0_i32_12 = arith.constant 0 : i32
    %c8_i32_13 = arith.constant 8 : i32
    %c0_i32_14 = arith.constant 0 : i32
    %12 = tpu.memref_slice %arg3[%c0_i32_12, %c8_i32_13, %c0_i32_14] : memref<2x32x256xf32, #tpu.memory_space<any>> -> memref<2x16x256xf32, #tpu.memory_space<any>>
    %13 = tpu.memref_slice %arg4[%c1_i32_11] : memref<3x!tpu.dma_semaphore, #tpu.memory_space<semaphore_mem>> -> memref<1x!tpu.dma_semaphore, #tpu.memory_space<semaphore_mem>>
    %14 = tpu.memref_squeeze %13 : memref<1x!tpu.dma_semaphore, #tpu.memory_space<semaphore_mem>> -> memref<!tpu.dma_semaphore, #tpu.memory_space<semaphore_mem>>
    tpu.wait_dma2 semaphore(%14 : memref<!tpu.dma_semaphore, #tpu.memory_space<semaphore_mem>>) src(%arg1 : memref<2x16x256xf32, #tpu.memory_space<any>>) dst(%12 : memref<2x16x256xf32, #tpu.memory_space<any>>)
    %c2_i32_15 = arith.constant 2 : i32
    %c0_i32_16 = arith.constant 0 : i32
    %c24_i32_17 = arith.constant 24 : i32
    %c0_i32_18 = arith.constant 0 : i32
    %15 = tpu.memref_slice %arg3[%c0_i32_16, %c24_i32_17, %c0_i32_18] : memref<2x32x256xf32, #tpu.memory_space<any>> -> memref<2x8x256xf32, #tpu.memory_space<any>>
    %16 = tpu.memref_slice %arg4[%c2_i32_15] : memref<3x!tpu.dma_semaphore, #tpu.memory_space<semaphore_mem>> -> memref<1x!tpu.dma_semaphore, #tpu.memory_space<semaphore_mem>>
    %17 = tpu.memref_squeeze %16 : memref<1x!tpu.dma_semaphore, #tpu.memory_space<semaphore_mem>> -> memref<!tpu.dma_semaphore, #tpu.memory_space<semaphore_mem>>
    tpu.wait_dma2 semaphore(%17 : memref<!tpu.dma_semaphore, #tpu.memory_space<semaphore_mem>>) src(%arg2 : memref<2x8x256xf32, #tpu.memory_space<any>>) dst(%15 : memref<2x8x256xf32, #tpu.memory_space<any>>)
    return
  }
}

module attributes {stable_mosaic.version = 11 : i64} {
  func.func @_copy_concat_kernel(%arg0: i32, %arg1: i32, %arg2: memref<1x8x128xf32, #tpu.memory_space<vmem>>, %arg3: memref<1x16x128xf32, #tpu.memory_space<vmem>>, %arg4: memref<1x8x128xf32, #tpu.memory_space<vmem>>, %arg5: memref<1x32x128xf32, #tpu.memory_space<vmem>>) attributes {dimension_semantics = [#tpu.dimension_semantics<parallel>, #tpu.dimension_semantics<parallel>], iteration_bounds = array<i64: 2, 2>, scalar_prefetch = 0 : i64, scratch_operands = 0 : i64, tpu.core_type = #tpu.core_type<tc>, window_params = [{transform_indices = @transform_0, window_bounds = array<i64: 1, 8, 128>}, {transform_indices = @transform_1, window_bounds = array<i64: 1, 16, 128>}, {transform_indices = @transform_2, window_bounds = array<i64: 1, 8, 128>}, {transform_indices = @transform_3, window_bounds = array<i64: 1, 32, 128>}]} {
    %c0 = arith.constant 0 : index
    %c0_0 = arith.constant 0 : index
    %c0_1 = arith.constant 0 : index
    %0 = vector.load %arg2[%c0, %c0_0, %c0_1] : memref<1x8x128xf32, #tpu.memory_space<vmem>>, vector<1x8x128xf32>
    %c0_2 = arith.constant 0 : index
    %c0_3 = arith.constant 0 : index
    %c0_4 = arith.constant 0 : index
    %1 = vector.load %arg5[%c0_2, %c0_3, %c0_4] : memref<1x32x128xf32, #tpu.memory_space<vmem>>, vector<1x8x128xf32>
    tpu.vector_store %arg5[%c0_2, %c0_3, %c0_4], %0 {strides = array<i32>} : memref<1x32x128xf32, #tpu.memory_space<vmem>>, vector<1x8x128xf32>,
    %c0_5 = arith.constant 0 : index
    %c0_6 = arith.constant 0 : index
    %c0_7 = arith.constant 0 : index
    %2 = vector.load %arg3[%c0_5, %c0_6, %c0_7] : memref<1x16x128xf32, #tpu.memory_space<vmem>>, vector<1x16x128xf32>
    %c0_8 = arith.constant 0 : index
    %c8 = arith.constant 8 : index
    %c0_9 = arith.constant 0 : index
    %3 = vector.load %arg5[%c0_8, %c8, %c0_9] : memref<1x32x128xf32, #tpu.memory_space<vmem>>, vector<1x16x128xf32>
    tpu.vector_store %arg5[%c0_8, %c8, %c0_9], %2 {strides = array<i32>} : memref<1x32x128xf32, #tpu.memory_space<vmem>>, vector<1x16x128xf32>,
    %c0_10 = arith.constant 0 : index
    %c0_11 = arith.constant 0 : index
    %c0_12 = arith.constant 0 : index
    %4 = vector.load %arg4[%c0_10, %c0_11, %c0_12] : memref<1x8x128xf32, #tpu.memory_space<vmem>>, vector<1x8x128xf32>
    %c0_13 = arith.constant 0 : index
    %c24 = arith.constant 24 : index
    %c0_14 = arith.constant 0 : index
    %5 = vector.load %arg5[%c0_13, %c24, %c0_14] : memref<1x32x128xf32, #tpu.memory_space<vmem>>, vector<1x8x128xf32>
    tpu.vector_store %arg5[%c0_13, %c24, %c0_14], %4 {strides = array<i32>} : memref<1x32x128xf32, #tpu.memory_space<vmem>>, vector<1x8x128xf32>,
    return
  }
  func.func @transform_0(%arg0: i32, %arg1: i32) -> (i32, i32, i32) {
    %c0_i32 = arith.constant 0 : i32
    %c0_i32_0 = arith.constant 0 : i32
    return %arg0, %c0_i32, %arg1 : i32, i32, i32
  }
  func.func @transform_1(%arg0: i32, %arg1: i32) -> (i32, i32, i32) {
    %c0_i32 = arith.constant 0 : i32
    %c0_i32_0 = arith.constant 0 : i32
    return %arg0, %c0_i32, %arg1 : i32, i32, i32
  }
  func.func @transform_2(%arg0: i32, %arg1: i32) -> (i32, i32, i32) {
    %c0_i32 = arith.constant 0 : i32
    %c0_i32_0 = arith.constant 0 : i32
    return %arg0, %c0_i32, %arg1 : i32, i32, i32
  }
  func.func @transform_3(%arg0: i32, %arg1: i32) -> (i32, i32, i32) {
    %c0_i32 = arith.constant 0 : i32
    %c0_i32_0 = arith.constant 0 : i32
    return %arg0, %c0_i32, %arg1 : i32, i32, i32
  }
}

</mosaic_0001>

<bundles_post_ra>
// kernel: tpu_custom_call.1
= control target key start
LH: loop header
LB: loop body
LE: loop exit
PB: predicated region body
PF: predicated region fallthrough
CT: control target
= control target key end

     0   :  { %s118_s18 = smov 256   ;;  %s119_s19 = smov 1024   ;;  %s168_s0 = inlined_call_operand.hbm [shape: f32[2,8,256], index: 0, kind: input, shape index: {}]   ;;  %s169_s1 = inlined_call_operand.hbm [shape: f32[2,16,256], index: 1, kind: input, shape index: {}]   ;;  %s170_s2 = inlined_call_operand.hbm [shape: f32[2,8,256], index: 2, kind: input, shape index: {}]   ;;  %s171_s3 = inlined_call_operand.hbm [shape: f32[2,32,256], index: 3, kind: output, shape index: {}]  }
   0x1   :  { %s12_s14 = sshll.u32 %s168_s0, 4  ;;  %s14_s17 = sshll.u32 %s171_s3, 4  ;;  %s13_s14 = int_to_ptr.hbm [resolvable:$true] %s12_s14  ;;  %s15_s17 = int_to_ptr.hbm [resolvable:$true] %s14_s17 }
   0x2   :  { %19 = sst [smem:[#allocation4]] %s118_s18  ;;  %s120_s20 = smov 16  }
   0x3   :  { %21 = sst [smem:[#allocation4 + $0x1]] %s119_s19  ;;  %s121_s21 = smov [#allocation2]  }
   0x4   :  { %23 = sst [smem:[#allocation4 + $0x2]] %s120_s20  ;;  %s122_s22 = smov [#allocation3]  }
   0x5   :  { %s123_s23 = smov 0   ;;  %s124_s24 = smov 512  }
   0x6   :  { %25 = dma.general %s13_s14, 512, %s15_s17, %s121_s21, %s122_s22, [#allocation4], %s123_s23, 0  }
   0x7   :  { %39 = sst [smem:[#allocation6]] %s124_s24  ;;  %s26_s26 = scalar_lea.hbm %s171_s3, 16 }
   0x8   :  { %41 = sst [smem:[#allocation6 + $0x1]] %s119_s19  ;;  %s125_s27 = smov 32  }
   0x9   :  { %43 = sst [smem:[#allocation6 + $0x2]] %s125_s27  ;;  %s32_s30 = sshll.u32 %s169_s1, 4  ;;  %s33_s30 = int_to_ptr.hbm [resolvable:$true] %s32_s30 }
   0xa   :  { %s34_s4 = sshll.u32 %s26_s26, 4  ;;  %s46_s7 = scalar_lea.hbm %s171_s3, 48  ;;  %s35_s4 = int_to_ptr.hbm [resolvable:$true] %s34_s4 }
   0xb   :  { %s126_s8 = smov [#allocation2 + $0x1]   ;;  %s127_s9 = smov [#allocation5]  }
   0xc   :  { %45 = dma.general %s33_s30, 1024, %s35_s4, %s126_s8, %s127_s9, [#allocation6], %s123_s23, 0  }
   0xd   :  { %59 = sst [smem:[#allocation8]] %s118_s18  ;;  %s52_s12 = sshll.u32 %s170_s2, 4  ;;  %s53_s12 = int_to_ptr.hbm [resolvable:$true] %s52_s12 }
   0xe   :  { %61 = sst [smem:[#allocation8 + $0x1]] %s119_s19  ;;  %s54_s13 = sshll.u32 %s46_s7, 4  ;;  %s55_s13 = int_to_ptr.hbm [resolvable:$true] %s54_s13 }
   0xf   :  { %63 = sst [smem:[#allocation8 + $0x2]] %s120_s20  ;;  %s128_s1 = smov [#allocation2 + $0x2]  }
  0x10   :  { %s129_s14 = smov [#allocation7]  }
  0x11   :  { %65 = dma.general %s53_s12, 512, %s55_s13, %s128_s1, %s129_s14, [#allocation8], %s123_s23, 0  }
  0x12   :  { %112 = dma.done.wait [#allocation2], 512 }
  0x13   :  { %113 = vsyncadd [#allocation2], 4294966784 }
  0x14   :  { %114 = dma.done.wait [#allocation2 + $0x1], 1024 }
  0x15   :  { %115 = vsyncadd [#allocation2 + $0x1], 4294966272 }
  0x16   :  { %116 = dma.done.wait [#allocation2 + $0x2], 512 }
  0x17   :  { %117 = vsyncadd [#allocation2 + $0x2], 4294966784 }
  0x18   :  { %77 = vsyncmov [#allocation2] }
  0x1b   :  { %s78_s3 = vpop.sfrf %77 }
  0x1c   :  { %p97_p0 = scmp.ne.s32.totalorder %s78_s3, 0 }
  0x1e   :  { %82 = shalt.err (%p97_p0)  }
  0x1f   :  { %84 = vsyncmov [#allocation2 + $0x1] }
  0x22   :  { %s85_s2 = vpop.sfrf %84 }
  0x23   :  { %p98_p1 = scmp.ne.s32.totalorder %s85_s2, 0 }
  0x25   :  { %89 = shalt.err (%p98_p1)  }
  0x26   :  { %91 = vsyncmov [#allocation2 + $0x2] }
  0x29   :  { %s92_s15 = vpop.sfrf %91 }
  0x2a   :  { %p99_p2 = scmp.ne.s32.totalorder %s92_s15, 0 }
  0x2c   :  { %96 = shalt.err (%p99_p2)  }

// kernel: tpu_custom_call.1
= control target key start
LH: loop header
LB: loop body
LE: loop exit
PB: predicated region body
PF: predicated region fallthrough
CT: control target
= control target key end

     0   :  { %s974_s0 = inlined_call_operand.hbm [shape: f32[2,8,256], index: 0, kind: input, shape index: {}]   ;;  %s975_s1 = inlined_call_operand.hbm [shape: f32[2,16,256], index: 1, kind: input, shape index: {}]   ;;  %s976_s2 = inlined_call_operand.hbm [shape: f32[2,8,256], index: 2, kind: input, shape index: {}]   ;;  %s977_s3 = inlined_call_operand.hbm [shape: f32[2,32,256], index: 3, kind: output, shape index: {}]  }
   0x1   :  { %984 = sst [smem:[#allocation19_spill]] %s975_s1 }
   0x2   :  { %8 = vsyncpa [#allocation3], 0 }
   0x3   :  { %10 = vsyncpa [#allocation3 + $0x1], 0 }
   0x4   :  { %11 = vsyncpa [#allocation6], 0 }
   0x5   :  { %13 = vsyncpa [#allocation6 + $0x1], 0 }
   0x6   :  { %14 = vsyncpa [#allocation4], 0 }
   0x7   :  { %16 = vsyncpa [#allocation4 + $0x1], 0  ;;  %s788_s12 = smov 0   ;;  %s790_s13 = smov 0  }
   0x8   :  { %s792_s14 = smov 0   ;;  %s794_s15 = smov 0  }
   0x9   :  { %s796_s16 = smov 0   ;;  %s798_s17 = smov 0  }
   0xa   :  { %s800_s18 = smov 0   ;;  %s802_s19 = smov 0  }
   0xb LB: > { %985 = sst [smem:[#allocation12_spill]] %s732_s12  ;;  %s829_s20 = sadd.s32 4294967295, %s760_s19   ;;  %s760_s19 = sphi %s802_s19, %s22_s19   ;;  %s756_s18 = sphi %s800_s18, %s1005_s18   ;;  %s752_s17 = sphi %s798_s17, %s1009_s17   ;;  %s748_s16 = sphi %s796_s16, %s1003_s16   ;;  %s744_s15 = sphi %s794_s15, %s1008_s15   ;;  %s740_s14 = sphi %s792_s14, %s1002_s14   ;;  %s736_s13 = sphi %s790_s13, %s1007_s13   ;;  %s732_s12 = sphi %s788_s12, %s1006_s12  }
   0xc   : > { %986 = sst [smem:[#allocation13_spill]] %s740_s14  ;;  %s452_s21 = sadd.s32 4294967294, %s760_s19  }
   0xd   : > { %987 = sst [smem:[#allocation14_spill]] %s756_s18  ;;  %s31_s22 = sadd.s32 1, %s752_s17 }
   0xe   : > { %s34_s23 = sadd.s32 1, %s756_s18  ;;  %p32_p0 = scmp.ge.s32.totalorder %s31_s22, 2 }
   0xf   : > { %s43_s24 = sadd.s32 1, %s740_s14  ;;  %p50_p1 = scmp.ne.s32.totalorder %s740_s14, %s736_s13 }
  0x10   : > { %p51_p2 = scmp.eq.s32.totalorder %s760_s19, 0  ;;  %s1011_s22 = smov (%p32_p0, %s31_s22), 0 }
  0x11   : > { %988 = sst [smem:[#allocation15_spill]] %s1011_s22  ;;  %s1013_s23 = smov (!%p32_p0, %s34_s23), %s756_s18 }
  0x12   : > { %s39_s25 = ssub.s32 %s752_s17, %s1011_s22  ;;  %p843_p3 = por %p51_p2, %p50_p1 }
  0x13   : > { %p36_p4 = scmp.ge.s32.totalorder %s1013_s23, 2  ;;  %p56_p5 = scmp.ne.s32.totalorder %s736_s13, %s732_s12 }
  0x14   : > { %p57_p6 = scmp.eq.s32.totalorder %s829_s20, 0  ;;  %p138_p7 = scmp.eq.s32.totalorder %s829_s20, 3 }
  0x15   : > { %s1015_s23 = smov (%p36_p4, %s1013_s23), 0  ;;  %p144_p10 = scmp.eq.s32.totalorder %s452_s21, 3 }
  0x16   : > { %990 = sst [smem:[#allocation16_spill]] %s1015_s23  ;;  %p853_p8 = por %p57_p6, %p56_p5 }
  0x17   : > { %p857_p9 = por %p138_p7, %p50_p1  ;;  %s38_s29 = ssub.s32 %s756_s18, %s1015_s23 }
  0x18   : > { %s40_s30 = sor.u32 %s39_s25, %s38_s29  ;;  %p863_p12 = por %p144_p10, %p56_p5 }
  0x19   : > { %p41_p11 = scmp.eq.s32.totalorder %s40_s30, 0  ;;  %p496_p13 = scmp.lt.s32.totalorder %s760_s19, 4 }
  0x1a   : > { %s993_s4 = scalar_select %p863_p12, 1, 0 }
  0x1b   : > { %s869_s5 = sand.u32 1, %s740_s14   ;;  %p876_p0 = pnand %p496_p13, %p843_p3 }
  0x1c   : > { %994 = sst [smem:[#allocation17_spill]] %s993_s4  ;;  %s185_s8 = sand.u32 1, %s760_s19  }
  0x1d   : > { %s872_s6 = scalar_select %p41_p11, %s740_s14, %s43_s24  }
  0x1e   : > { %s458_s9 = sshll.u32 %s869_s5, 4  ;;  %s459_s10 = sshll.u32 %s756_s18, 2 }
  0x1f   : > { %995 = sst [smem:[#allocation18_spill]] %s872_s6  ;;  %s189_s11 = scalar_lea.vmem [#allocation5], %s458_s9 }
  0x20   : > { %s198_s21 = sshll.u32 %s189_s11, 4  ;;  %s193_s25 = sadd.s32 %s752_s17, %s459_s10  ;;  %s199_s21 = int_to_ptr.vmem [resolvable:$true] %s198_s21 }
  0x21   : > { %s460_s29 = sshll.u32 %s193_s25, 3  ;;  %s997_s1 = sld [smem:[#allocation19_spill]] }
  0x22   : > { %p464_p1 = scmp.ge.s32.totalorder %s760_s19, 1  ;;  %s186_s22 = scalar_lea.sflag [#allocation6], %s185_s8 }
  0x23   : > { %s762_s6 = smov 256   ;;  %s763_s14 = smov 128  }
  0x24   : > { %s764_s4 = smov 8   ;;  %p227_p2 = scmp.lt.s32.totalorder %s760_s19, 5 }
  0x25   : > { %s455_s10 = sshll.u32 %s869_s5, 3  ;;  %s456_s11 = sshll.u32 %s756_s18, 1 }
  0x26   : > { %p891_p3 = pnand %p464_p1, %p227_p2  ;;  %s172_s25 = sadd.s32 %s752_s17, %s456_s11 }
  0x27   : > { %s195_s26 = scalar_lea.hbm %s997_s1, %s460_s29  ;;  %s168_s29 = scalar_lea.vmem [#allocation2], %s455_s10 }
  0x28   : > { %s196_s23 = sshll.u32 %s195_s26, 4  ;;  %s178_s24 = sshll.u32 %s168_s29, 4  ;;  %s197_s23 = int_to_ptr.hbm [resolvable:$true] %s196_s23  ;;  %s179_s24 = int_to_ptr.vmem [resolvable:$true] %s178_s24 }
  0x29   : > { %488 = dma.hbm_to_vmem [thread:$0]  (!%p876_p0), %s197_s23, 256, %s199_s21, %s186_s22, %s762_s6, %s763_s14, %s764_s4  }
  0x2a   : > { %s457_s30 = sshll.u32 %s172_s25, 3  ;;  %s165_s21 = scalar_lea.sflag [#allocation3], %s869_s5 }
  0x2b   : > { %s174_s1 = scalar_lea.hbm %s974_s0, %s457_s30  ;;  %s218_s4 = scalar_lea.hbm %s976_s2, %s457_s30 }
  0x2c   : > { %s176_s12 = sshll.u32 %s174_s1, 4  ;;  %s220_s6 = sshll.u32 %s218_s4, 4  ;;  %s177_s12 = int_to_ptr.hbm [resolvable:$true] %s176_s12  ;;  %s221_s6 = int_to_ptr.hbm [resolvable:$true] %s220_s6 }
  0x2d   : > { %485 = dma.hbm_to_vmem [thread:$0]  (!%p876_p0), %s177_s12, 128, %s179_s24, %s165_s21  }
  0x2e   : > { %s212_s11 = scalar_lea.vmem [#allocation7], %s455_s10  ;;  %231 = sbr.rel (%p891_p3) target bundleno = 74 (0x4a), region = 32 }
  0x2f   : > { %s222_s18 = sshll.u32 %s212_s11, 4  ;;  %s912_s1 = sand.u32 (!%p891_p3), 1, %s736_s13   ;;  %s223_s18 = int_to_ptr.vmem [resolvable:$true] %s222_s18 }
  0x30   : > { %491 = dma.hbm_to_vmem [thread:$0]  (!%p876_p0), %s221_s6, 128, %s223_s18, %s186_s22  }
  0x31   : > { %s465_s25 = sshll.u32 (!%p891_p3), %s912_s1, 3  ;;  %s234_s29 = scalar_lea.sflag (!%p891_p3), [#allocation3], %s912_s1 }
  0x32   : > { %s237_s5 = scalar_lea.vmem (!%p891_p3), [#allocation2], %s465_s25 }
  0x33   : > { %719 = dma.done.wait (%p853_p8), %s234_s29, 128  }
  0x34   : > { %721 = vsyncadd (%p853_p8), %s234_s29, 4294967168  ;;  %s243_s12 = sand.u32 1, %s829_s20   ;;  %s466_s18 = sshll.u32 %s912_s1, 4 }
  0x35   : > { %s244_s22 = scalar_lea.sflag [#allocation6], %s243_s12  ;;  %s247_s7 = scalar_lea.vmem [#allocation5], %s466_s18 }
  0x36   : > { %723 = dma.done.wait (%p853_p8), %s244_s22, 384  }
  0x37   : > { %725 = vsyncadd (%p853_p8), %s244_s22, 4294966912  ;;  %s468_s9 = sshll.u32 %s912_s1, 5  ;;  %s470_s10 = sshll.u32 %s748_s16, 3  ;;  %v291_v0 = vld [vmem:[%s237_s5] sm:$0xff]  ;;  %v293_v1 = vld [vmem:[%s247_s7] sm:$0xff] }
  0x38   : > { %s310_s24 = sadd.s32 %s744_s15, %s470_s10  ;;  %s290_s30 = scalar_lea.vmem [#allocation8], %s468_s9  ;;  %v294_v2 = vld [vmem:[%s247_s7 + $0x8] sm:$0xff] }
  0x39   : > { %s313_s8 = sshll.u32 %s290_s30, 4  ;;  %s471_s26 = sshll.u32 %s310_s24, 3  ;;  %292 = vst [vmem:[%s290_s30] sm:$0xff] %v291_v0  ;;  %s932_s8 = int_to_ptr.vmem [resolvable:$true] %s313_s8 }
  0x3a   : > { %s312_s23 = scalar_lea.hbm %s977_s3, %s471_s26  ;;  %s257_s27 = scalar_lea.vmem [#allocation7], %s465_s25  ;;  %295 = vst [vmem:[%s290_s30 + $0x8] sm:$0xff] %v293_v1 }
  0x3b   : > { %s315_s4 = sshll.u32 %s312_s23, 4  ;;  %v297_v3 = vld [vmem:[%s257_s27] sm:$0xff]  ;;  %296 = vst [vmem:[%s290_s30 + $0x10] sm:$0xff] %v294_v2  ;;  %s300_s15 = scalar_lea.sflag [#allocation4], %s912_s1  ;;  %s316_s4 = int_to_ptr.hbm [resolvable:$true] %s315_s4 }
  0x3c   : > { %298 = vst [vmem:[%s290_s30 + $0x18] sm:$0xff] %v297_v3  ;;  %s672_s16 = sshra.s32 %s316_s4, 4  ;;  %s678_s29 = scalar_lea.hbm %s977_s3, 128  ;;  %s673_s16 = int_to_ptr.hbm [resolvable:$true] %s672_s16 }
  0x3d   : > { %s674_s6 = scalar_lea.hbm %s673_s16, 32  ;;  %p679_p7 = scmp.lt.s32.totalorder %s673_s16, %s977_s3 }
  0x3e   : > { %p675_p4 = scmp.ne.s32.totalorder %s673_s16, %s674_s6  ;;  %p680_p8 = scmp.lt.s32.totalorder %s678_s29, %s674_s6 }
  0x40   : > { %p676_p5 = pnand %p675_p4, %p857_p9  ;;  %p681_p10 = por %p680_p8, %p679_p7 }
  0x42   : > { %p677_p6 = pneg %p676_p5 }
  0x44   : > { %p682_p11 = pnand %p681_p10, %p677_p6 }
  0x46   : > { %685 = shalt.err (!%p682_p11)
}
  0x47   : > { %s765_s1 = smov 128   ;;  %s766_s25 = smov 256  }
  0x48   : > { %s767_s18 = smov 8  }
  0x49   : > { %480 = dma.vmem_to_hbm [thread:$0]  (%p857_p9), %s932_s8, 512, %s316_s4, %s300_s15, %s765_s1, %s766_s25, %s767_s18  }
  0x4a PF: > { %s999_s22 = sld [smem:[#allocation12_spill]]  ;;  %p497_p13 = scmp.ge.s32.totalorder %s760_s19, 2 }
  0x4c   : > { %p493_p0 = pnand %p497_p13, %p863_p12 }
  0x4e   : > { %p494_p1 = pneg %p493_p0 }
  0x50   : > { %s330_s9 = sand.u32 1, %s999_s22  }
  0x51   : > { %s331_s10 = scalar_lea.sflag [#allocation4], %s330_s9 }
  0x52   : > { %727 = dma.done.wait (%p494_p1), %s331_s10, 512  }
  0x53   : > { %729 = vsyncadd (%p494_p1), %s331_s10, 4294966784  ;;  %s22_s19 = sadd.s32 1, %s760_s19   ;;  %s1001_s24 = sld [smem:[#allocation13_spill]] }
  0x54   : > { %p19_p2 = scmp.ge.s32.totalorder %s22_s19, 6   ;;  %s1002_s14 = sld [smem:[#allocation18_spill]] }
  0x55   : > { %s1003_s16 = sld [smem:[#allocation14_spill]]  ;;  %s1006_s12 = smov %s736_s13 }
  0x56   : > { %s1004_s28 = sld [smem:[#allocation15_spill]]  ;;  %s1008_s15 = smov %s752_s17 }
  0x57   : > { %s1005_s18 = sld [smem:[#allocation16_spill]] }
  0x58   :  { %21 = sbr.rel (!%p19_p2) target bundleno = 11 (0xb), region = 101 }
  0x59   : > { %s1007_s13 = smov %s1001_s24 }
  0x5c   : > { %s1009_s17 = smov %s1004_s28 }
  0x5d   :  { %337 = vsyncpa [#allocation3], 1 }
  0x5e   :  { %339 = vsyncpa [#allocation3 + $0x1], 1 }
  0x5f   :  { %340 = vsyncpa [#allocation6], 1 }
  0x60   :  { %342 = vsyncpa [#allocation6 + $0x1], 1 }
  0x61   :  { %343 = vsyncpa [#allocation4], 1 }
  0x62   :  { %345 = vsyncpa [#allocation4 + $0x1], 1 }

</bundles_post_ra>
